<compile_context>
chip_gen: v6e
topology: v6e:2x2x1
jax: 0.10.0
libtpu: 0.0.40
codegen_flags: <defaults>
</compile_context>

<pallas_src>
import jax
import jax.numpy as jnp
from jax.experimental import pallas as pl
from jax.experimental.pallas import tpu as pltpu

# Logical (PyTorch) feature dims and their lane-padded versions.
D_IN, D_HID, D_OUT = 100, 300, 28 * 28          # 100, 300, 784
D_IN_P, D_HID_P, D_OUT_P = 128, 384, 896        # multiples of 128


def _round_up(n, m):
    return ((n + m - 1) // m) * m


def generator_kernel(x_ref, w1_ref, b1_ref, w2_ref, b2_ref, o_ref):
    # ---- Linear(100 -> 300) : bf16 MXU inputs, f32 accumulation ----
    h = jnp.dot(x_ref[...], w1_ref[...], preferred_element_type=jnp.float32)
    h = h + b1_ref[...]                       # (1, 384) bias broadcasts over batch
    h = jnp.where(h > 0, h, 0.2 * h)          # LeakyReLU(0.2) in f32

    # ---- Linear(300 -> 784) : bf16 MXU inputs, f32 accumulation ----
    y = jnp.dot(h.astype(jnp.bfloat16), w2_ref[...],
                preferred_element_type=jnp.float32)
    y = y + b2_ref[...]                       # (1, 896) bias

    # ---- Sigmoid: exp on EUP + approximate reciprocal on EUP ----
    e = jnp.exp(-y)
    o_ref[...] = pl.reciprocal(1.0 + e, approx=True).astype(o_ref.dtype)


def pad_params(w1, b1, w2, b2):
    """Zero-pad params to lane-aligned shapes; weights stored bf16 for the MXU.

    Inputs use (in_features, out_features) layout (transpose of nn.Linear.weight)
    and biases of shape (1, out_features), all float32.
    """
    w1p = jnp.zeros((D_IN_P, D_HID_P), jnp.bfloat16)
    w1p = w1p.at[:D_IN, :D_HID].set(w1.astype(jnp.bfloat16))
    b1p = jnp.zeros((1, D_HID_P), jnp.float32).at[:, :D_HID].set(b1.reshape(1, -1))
    w2p = jnp.zeros((D_HID_P, D_OUT_P), jnp.bfloat16)
    w2p = w2p.at[:D_HID, :D_OUT].set(w2.astype(jnp.bfloat16))
    b2p = jnp.zeros((1, D_OUT_P), jnp.float32).at[:, :D_OUT].set(b2.reshape(1, -1))
    return w1p, b1p, w2p, b2p


def generator_forward(x, w1p, b1p, w2p, b2p, *, tb=512):
    """x: (B, 100) float32 -> (B, 784) float32.  Params must come from pad_params."""
    B = x.shape[0]

    # Batch tile: TB <= ~512 keeps the (TB, 896) f32 output block a couple of
    # MiB (double-buffered), safe for v7x's smaller VMEM as well as v5e/v6e.
    TB = tb if B >= tb else _round_up(B, 8)
    Bp = _round_up(B, TB)

    # Pad batch + lane dims, cast activations to bf16 for the MXU.
    xp = jnp.zeros((Bp, D_IN_P), jnp.bfloat16)
    xp = xp.at[:B, :D_IN].set(x.astype(jnp.bfloat16))

    cost = pl.CostEstimate(
        flops=2 * Bp * (D_IN_P * D_HID_P + D_HID_P * D_OUT_P),
        transcendentals=Bp * D_OUT_P,
        bytes_accessed=(xp.size * 2            # bf16 input
                        + w1p.size * 2 + w2p.size * 2
                        + b1p.size * 4 + b2p.size * 4
                        + Bp * D_OUT_P * 4),   # f32 output
    )

    out_p = pl.pallas_call(
        generator_kernel,
        out_shape=jax.ShapeDtypeStruct((Bp, D_OUT_P), jnp.float32),
        grid=(Bp // TB,),
        in_specs=[
            pl.BlockSpec((TB, D_IN_P), lambda i: (i, 0)),       # x tile (pipelined)
            pl.BlockSpec((D_IN_P, D_HID_P), lambda i: (0, 0)),  # w1 (VMEM-resident)
            pl.BlockSpec((1, D_HID_P), lambda i: (0, 0)),       # b1
            pl.BlockSpec((D_HID_P, D_OUT_P), lambda i: (0, 0)), # w2 (VMEM-resident)
            pl.BlockSpec((1, D_OUT_P), lambda i: (0, 0)),       # b2
        ],
        out_specs=pl.BlockSpec((TB, D_OUT_P), lambda i: (i, 0)),
        compiler_params=pltpu.CompilerParams(
            dimension_semantics=("parallel",),  # megacore sharding on v7x
        ),
        cost_estimate=cost,
    )(xp, w1p, b1p, w2p, b2p)

    # Slice away batch / lane padding outside the kernel.
    return out_p[:B, :D_OUT]


def init_params(key):
    """Deterministic parameter init matching nn.Linear shapes (transposed)."""
    k1, k2, k3, k4 = jax.random.split(key, 4)
    # PyTorch nn.Linear default init: U(-1/sqrt(fan_in), 1/sqrt(fan_in))
    lim1 = 1.0 / jnp.sqrt(D_IN)
    lim2 = 1.0 / jnp.sqrt(D_HID)
    w1 = jax.random.uniform(k1, (D_IN, D_HID), jnp.float32, -lim1, lim1)
    b1 = jax.random.uniform(k2, (1, D_HID), jnp.float32, -lim1, lim1)
    w2 = jax.random.uniform(k3, (D_HID, D_OUT), jnp.float32, -lim2, lim2)
    b2 = jax.random.uniform(k4, (1, D_OUT), jnp.float32, -lim2, lim2)
    return w1, b1, w2, b2


def reference_forward(x, w1, b1, w2, b2):
    h = x @ w1 + b1
    h = jnp.where(h > 0, h, 0.2 * h)
    y = h @ w2 + b2
    return jax.nn.sigmoid(y)


if __name__ == "__main__":
    key = jax.random.PRNGKey(0)
    kx, kx2, kp = jax.random.split(key, 3)

    w1, b1, w2, b2 = init_params(kp)
    w1p, b1p, w2p, b2p = pad_params(w1, b1, w2, b2)

    # Small batch: single grid step.
    B = 8
    x = jax.random.normal(kx, (B, D_IN), dtype=jnp.float32)  # latent noise z
    out = jax.block_until_ready(generator_forward(x, w1p, b1p, w2p, b2p))
    ref = reference_forward(x, w1, b1, w2, b2)
    assert out.shape == (B, D_OUT)
    # bf16 MXU inputs => loosened tolerance vs full-f32 reference.
    assert jnp.allclose(out, ref, atol=2e-2, rtol=2e-2), "mismatch vs reference (B=8)"

    # Larger batch with a small tile to exercise the multi-step pipelined grid.
    B2 = 64
    x2 = jax.random.normal(kx2, (B2, D_IN), dtype=jnp.float32)
    out2 = jax.block_until_ready(
        generator_forward(x2, w1p, b1p, w2p, b2p, tb=16))  # grid of 4 steps
    ref2 = reference_forward(x2, w1, b1, w2, b2)
    assert out2.shape == (B2, D_OUT)
    assert jnp.allclose(out2, ref2, atol=2e-2, rtol=2e-2), "mismatch vs reference (B=64)"

    print("KERNEL_OK")
</pallas_src>

<mosaic_0001>
module attributes {stable_mosaic.version = 11 : i64} {
  func.func @generator_kernel(%arg0: i32, %arg1: memref<8x128xbf16, #tpu.memory_space<vmem>>, %arg2: memref<128x384xbf16, #tpu.memory_space<vmem>>, %arg3: memref<1x384xf32, #tpu.memory_space<vmem>>, %arg4: memref<384x896xbf16, #tpu.memory_space<vmem>>, %arg5: memref<1x896xf32, #tpu.memory_space<vmem>>, %arg6: memref<8x896xf32, #tpu.memory_space<vmem>>) attributes {dimension_semantics = [#tpu.dimension_semantics<parallel>], iteration_bounds = array<i64: 1>, scalar_prefetch = 0 : i64, scratch_operands = 0 : i64, tpu.core_type = #tpu.core_type<tc>, window_params = [{transform_indices = @transform_0, window_bounds = array<i64: 8, 128>}, {pipeline_mode = #tpu.pipeline_mode<synchronous>, transform_indices = @transform_1, window_bounds = array<i64: 128, 384>}, {pipeline_mode = #tpu.pipeline_mode<synchronous>, transform_indices = @transform_2, window_bounds = array<i64: 1, 384>}, {pipeline_mode = #tpu.pipeline_mode<synchronous>, transform_indices = @transform_3, window_bounds = array<i64: 384, 896>}, {pipeline_mode = #tpu.pipeline_mode<synchronous>, transform_indices = @transform_4, window_bounds = array<i64: 1, 896>}, {transform_indices = @transform_5, window_bounds = array<i64: 8, 896>}]} {
    %c0 = arith.constant 0 : index
    %c0_0 = arith.constant 0 : index
    %0 = vector.load %arg1[%c0, %c0_0] : memref<8x128xbf16, #tpu.memory_space<vmem>>, vector<8x128xbf16>
    %c0_1 = arith.constant 0 : index
    %c0_2 = arith.constant 0 : index
    %1 = vector.load %arg2[%c0_1, %c0_2] : memref<128x384xbf16, #tpu.memory_space<vmem>>, vector<128x384xbf16>
    %cst = arith.constant dense<0.000000e+00> : vector<8x384xf32>
    %2 = tpu.matmul %0, %1, %cst {dimension_numbers = #tpu.dot_dimension_numbers<[1], [0], [0], [1], [0, 0, 1, 1], [], []>} : vector<8x128xbf16>, vector<128x384xbf16>, vector<8x384xf32> -> vector<8x384xf32>
    %c0_3 = arith.constant 0 : index
    %c0_4 = arith.constant 0 : index
    %3 = vector.load %arg3[%c0_3, %c0_4] : memref<1x384xf32, #tpu.memory_space<vmem>>, vector<1x384xf32>
    %4 = vector.broadcast %3 : vector<1x384xf32> to vector<8x384xf32>
    %5 = arith.addf %2, %4 : vector<8x384xf32>
    %cst_5 = arith.constant 0.000000e+00 : f32
    %6 = vector.broadcast %cst_5 : f32 to vector<8x384xf32>
    %7 = arith.cmpf ogt, %5, %6 : vector<8x384xf32>
    %cst_6 = arith.constant 2.000000e-01 : f32
    %8 = vector.broadcast %cst_6 : f32 to vector<8x384xf32>
    %9 = arith.mulf %8, %5 : vector<8x384xf32>
    %10 = arith.select %7, %5, %9 : vector<8x384xi1>, vector<8x384xf32>
    %11 = arith.truncf %10 : vector<8x384xf32> to vector<8x384xbf16>
    %c0_7 = arith.constant 0 : index
    %c0_8 = arith.constant 0 : index
    %12 = vector.load %arg4[%c0_7, %c0_8] : memref<384x896xbf16, #tpu.memory_space<vmem>>, vector<384x896xbf16>
    %cst_9 = arith.constant dense<0.000000e+00> : vector<8x896xf32>
    %13 = tpu.matmul %11, %12, %cst_9 {dimension_numbers = #tpu.dot_dimension_numbers<[1], [0], [0], [1], [0, 0, 1, 1], [], []>} : vector<8x384xbf16>, vector<384x896xbf16>, vector<8x896xf32> -> vector<8x896xf32>
    %c0_10 = arith.constant 0 : index
    %c0_11 = arith.constant 0 : index
    %14 = vector.load %arg5[%c0_10, %c0_11] : memref<1x896xf32, #tpu.memory_space<vmem>>, vector<1x896xf32>
    %15 = vector.broadcast %14 : vector<1x896xf32> to vector<8x896xf32>
    %16 = arith.addf %13, %15 : vector<8x896xf32>
    %cst_12 = arith.constant 0.000000e+00 : f32
    %17 = vector.broadcast %cst_12 : f32 to vector<8x896xf32>
    %18 = arith.subf %17, %16 : vector<8x896xf32>
    %19 = math.exp %18 : vector<8x896xf32>
    %cst_13 = arith.constant 1.000000e+00 : f32
    %20 = vector.broadcast %cst_13 : f32 to vector<8x896xf32>
    %21 = arith.addf %20, %19 : vector<8x896xf32>
    %22 = tpu.reciprocal %21 {approx = true} : vector<8x896xf32> -> vector<8x896xf32>
    %c0_14 = arith.constant 0 : index
    %c0_15 = arith.constant 0 : index
    %23 = vector.load %arg6[%c0_14, %c0_15] : memref<8x896xf32, #tpu.memory_space<vmem>>, vector<8x896xf32>
    tpu.vector_store %arg6[%c0_14, %c0_15], %22 {strides = array<i32>} : memref<8x896xf32, #tpu.memory_space<vmem>>, vector<8x896xf32>,
    return
  }
  func.func @transform_0(%arg0: i32) -> (i32, i32) {
    %c0_i32 = arith.constant 0 : i32
    %c0_i32_0 = arith.constant 0 : i32
    return %arg0, %c0_i32 : i32, i32
  }
  func.func @transform_1(%arg0: i32) -> (i32, i32) {
    %c0_i32 = arith.constant 0 : i32
    %c0_i32_0 = arith.constant 0 : i32
    %c0_i32_1 = arith.constant 0 : i32
    return %c0_i32, %c0_i32_0 : i32, i32
  }
  func.func @transform_2(%arg0: i32) -> (i32, i32) {
    %c0_i32 = arith.constant 0 : i32
    %c0_i32_0 = arith.constant 0 : i32
    %c0_i32_1 = arith.constant 0 : i32
    return %c0_i32, %c0_i32_0 : i32, i32
  }
  func.func @transform_3(%arg0: i32) -> (i32, i32) {
    %c0_i32 = arith.constant 0 : i32
    %c0_i32_0 = arith.constant 0 : i32
    %c0_i32_1 = arith.constant 0 : i32
    return %c0_i32, %c0_i32_0 : i32, i32
  }
  func.func @transform_4(%arg0: i32) -> (i32, i32) {
    %c0_i32 = arith.constant 0 : i32
    %c0_i32_0 = arith.constant 0 : i32
    %c0_i32_1 = arith.constant 0 : i32
    return %c0_i32, %c0_i32_0 : i32, i32
  }
  func.func @transform_5(%arg0: i32) -> (i32, i32) {
    %c0_i32 = arith.constant 0 : i32
    %c0_i32_0 = arith.constant 0 : i32
    return %arg0, %c0_i32 : i32, i32
  }
}

</mosaic_0001>

<bundles_post_ra>
// kernel: tpu_custom_call.1
= control target key start
LH: loop header
LB: loop body
LE: loop exit
PB: predicated region body
PF: predicated region fallthrough
CT: control target
= control target key end

     0   :  { %10 = vsyncpa [#allocation3], 0  ;;  %s2646_s0 = inlined_call_operand.hbm [shape: bf16[8,128], index: 0, kind: input, shape index: {}]   ;;  %s2647_s1 = inlined_call_operand.hbm [shape: bf16[128,384], index: 1, kind: input, shape index: {}]   ;;  %s2648_s2 = inlined_call_operand.hbm [shape: f32[1,384], index: 2, kind: input, shape index: {}]   ;;  %s2649_s3 = inlined_call_operand.hbm [shape: bf16[384,896], index: 3, kind: input, shape index: {}]   ;;  %s2650_s4 = inlined_call_operand.vmem [shape: f32[1,896], index: 4, kind: input, shape index: {}]   ;;  %s2651_s5 = inlined_call_operand.hbm [shape: f32[8,896], index: 5, kind: output, shape index: {}]  }
   0x1   :  { %11 = vsyncpa [#allocation6], 0 }
   0x2   :  { %12 = vsyncpa [#allocation9], 0 }
   0x3   :  { %13 = vsyncpa [#allocation4], 0  ;;  %s2514_s18 = smov [#allocation5]  }
   0x4   :  { %s29_s19 = sshll.u32 %s2514_s18, 4  ;;  %s30_s19 = int_to_ptr.vmem [resolvable:$true] %s29_s19 }
   0x5   :  { %s2414_s20 = scalar_lea.vmem %s30_s19, 3072  ;;  %p2419_p1 = scmp.lt.s32.totalorder %s30_s19, %s30_s19 }
   0x6   :  { %p2415_p0 = scmp.ne.s32.totalorder %s30_s19, %s2414_s20  ;;  %p2420_p2 = scmp.lt.s32.totalorder %s2414_s20, %s2414_s20 }
   0x8   :  { %p2421_p3 = por %p2420_p2, %p2419_p1 }
   0xa   :  { %p2422_p4 = pnand %p2421_p3, %p2415_p0 }
   0xc   :  { %2425 = shalt.err (!%p2422_p4)
}
   0xd   :  { %s2515_s21 = smov 192   ;;  %s2516_s22 = smov 12  }
   0xe   :  { %35 = dma.hbm_to_vmem [thread:$0]  %s2647_s1, 3072, %s30_s19, [#allocation6], %s2515_s21, %s2515_s21, %s2516_s22  }
   0xf   :  { %s2517_s25 = smov [#allocation2]   ;;  %s2518_s27 = smov [#allocation7]  }
  0x10   :  { %s20_s26 = sshll.u32 %s2517_s25, 4  ;;  %s42_s28 = sshll.u32 %s2518_s27, 4  ;;  %s21_s26 = int_to_ptr.vmem [resolvable:$true] %s20_s26  ;;  %s43_s28 = int_to_ptr.vmem [resolvable:$true] %s42_s28 }
  0x11   :  { %s2434_s29 = scalar_lea.vmem %s21_s26, 64  ;;  %p2439_p6 = scmp.lt.s32.totalorder %s21_s26, %s21_s26 }
  0x12   :  { %p2435_p5 = scmp.ne.s32.totalorder %s21_s26, %s2434_s29  ;;  %p2440_p7 = scmp.lt.s32.totalorder %s2434_s29, %s2434_s29 }
  0x14   :  { %p2441_p8 = por %p2440_p7, %p2439_p6 }
  0x16   :  { %p2442_p9 = pnand %p2441_p8, %p2435_p5 }
  0x18   :  { %2445 = shalt.err (!%p2442_p9)
}
  0x19   :  { %23 = dma.hbm_to_vmem [thread:$0]  %s2646_s0, 64, %s21_s26, [#allocation3]  }
  0x1a   :  { %s2454_s7 = scalar_lea.vmem %s43_s28, 48  ;;  %s2458_s1 = scalar_lea.vmem %s43_s28, 64 }
  0x1b   :  { %p2455_p10 = scmp.ne.s32.totalorder %s43_s28, %s2454_s7  ;;  %p2459_p11 = scmp.lt.s32.totalorder %s43_s28, %s43_s28 }
  0x1c   :  { %p2460_p12 = scmp.lt.s32.totalorder %s2458_s1, %s2454_s7 }
  0x1e   :  { %p2461_p13 = por %p2460_p12, %p2459_p11 }
  0x20   :  { %p2462_p0 = pnand %p2461_p13, %p2455_p10 }
  0x22   :  { %2465 = shalt.err (!%p2462_p0)
}
  0x23   :  { %45 = dma.hbm_to_vmem [thread:$0]  %s2648_s2, 48, %s43_s28, [#allocation6]  }
  0x24   :  { %s2519_s10 = smov [#allocation8]  }
  0x25   :  { %s51_s11 = sshll.u32 %s2519_s10, 4  ;;  %s52_s11 = int_to_ptr.vmem [resolvable:$true] %s51_s11 }
  0x26   :  { %s2474_s12 = scalar_lea.vmem %s52_s11, 21504  ;;  %p2479_p2 = scmp.lt.s32.totalorder %s52_s11, %s52_s11 }
  0x27   :  { %p2475_p1 = scmp.ne.s32.totalorder %s52_s11, %s2474_s12  ;;  %p2480_p3 = scmp.lt.s32.totalorder %s2474_s12, %s2474_s12 }
  0x29   :  { %p2481_p4 = por %p2480_p3, %p2479_p2 }
  0x2b   :  { %p2482_p5 = pnand %p2481_p4, %p2475_p1 }
  0x2d   :  { %2485 = shalt.err (!%p2482_p5)
}
  0x2e   :  { %s2520_s0 = smov 448   ;;  %s2521_s13 = smov 28  }
  0x2f   :  { %57 = dma.hbm_to_vmem [thread:$0]  %s2649_s3, 21504, %s52_s11, [#allocation9], %s2520_s0, %s2520_s0, %s2521_s13  }
  0x30   :  { %2506 = dma.done.wait [#allocation3], 64  }
  0x31   :  { %2507 = vsyncadd [#allocation3], 4294967232 }
  0x32   :  { %2508 = dma.done.wait [#allocation6], 3120  }
  0x33   :  { %2509 = vsyncadd [#allocation6], 4294964176 }
  0x34   :  { %2510 = dma.done.wait [#allocation9], 21504  }
  0x35   :  { %2511 = vsyncadd [#allocation9], 4294945792  ;;  %v2522_v0 = vmov 0.0   ;;  %vm2523_vm0 = vmmov 0   ;;  %v2524_v1 = vmov 0  }
  0x36   :  { %2054 = vmatprep.subr.bf16.mxu1 %v2522_v0  ;;  %2070 = vmatprep.mubr.msk.bf16.mxu1 %vm2523_vm0, %v2522_v0  ;;  %v2106_v2 = vld [vmem:[#allocation5 + $0xac] ss:$12 sps:$4 sm:$0xff]   ;;  %v2108_v3 = vld [vmem:[#allocation5 + $0xb0] ss:$12 sps:$4 sm:$0xff]   ;;  %v2109_v4 = vld [vmem:[#allocation5 + $0xa8] ss:$12 sps:$4 sm:$0xff]  }
  0x37   :  { %283 = vmatprep.mubr.bf16.mxu0 %v2524_v1  ;;  %251 = vmatprep.subr.bf16.mxu0 %v2106_v2  ;;  %v2110_v5 = vld [vmem:[#allocation5 + $0x94] ss:$12 sps:$4 sm:$0xff]   ;;  %v2112_v6 = vld [vmem:[#allocation5 + $0x98] ss:$12 sps:$4 sm:$0xff]   ;;  %v2113_v7 = vld [vmem:[#allocation5 + $0x90] ss:$12 sps:$4 sm:$0xff]  }
  0x38   :  { %2055 = vmatpush3.bf16.msra.mxu1 %v2108_v3  ;;  %252 = vmatpush1.bf16.msra.mxu0 %v2109_v4  ;;  %v2114_v8 = vld [vmem:[#allocation5 + $0x7c] ss:$12 sps:$4 sm:$0xff]   ;;  %v2116_v9 = vld [vmem:[#allocation5 + $0x80] ss:$12 sps:$4 sm:$0xff]   ;;  %v2117_v10 = vld [vmem:[#allocation5 + $0x78] ss:$12 sps:$4 sm:$0xff]  }
  0x39   :  { %2056 = vmatprep.subr.bf16.mxu1 %v2522_v0  ;;  %253 = vmatprep.subr.bf16.mxu0 %v2110_v5  ;;  %v2118_v11 = vld [vmem:[#allocation5 + $0x64] ss:$12 sps:$4 sm:$0xff]   ;;  %v2120_v12 = vld [vmem:[#allocation5 + $0x68] ss:$12 sps:$4 sm:$0xff]   ;;  %v2121_v13 = vld [vmem:[#allocation5 + $0x60] ss:$12 sps:$4 sm:$0xff]  }
  0x3a   :  { %v2122_v14 = vld [vmem:[#allocation5 + $0x4c] ss:$12 sps:$4 sm:$0xff]   ;;  %v2124_v15 = vld [vmem:[#allocation5 + $0x50] ss:$12 sps:$4 sm:$0xff]   ;;  %v2125_v16 = vld [vmem:[#allocation5 + $0x48] ss:$12 sps:$4 sm:$0xff]  }
  0x3b   :  { %v2126_v17 = vld [vmem:[#allocation5 + $0x34] ss:$12 sps:$4 sm:$0xff]   ;;  %v2128_v18 = vld [vmem:[#allocation5 + $0x38] ss:$12 sps:$4 sm:$0xff]   ;;  %v2129_v19 = vld [vmem:[#allocation5 + $0x30] ss:$12 sps:$4 sm:$0xff]  }
  0x3c   :  { %2057 = vmatpush3.bf16.msra.mxu1 %v2112_v6  ;;  %254 = vmatpush1.bf16.msra.mxu0 %v2113_v7  ;;  %v2130_v20 = vld [vmem:[#allocation5 + $0x1c] ss:$12 sps:$4 sm:$0xff]   ;;  %v2132_v21 = vld [vmem:[#allocation5 + $0x20] ss:$12 sps:$4 sm:$0xff]   ;;  %v2133_v22 = vld [vmem:[#allocation5 + $0x18] ss:$12 sps:$4 sm:$0xff]  }
  0x3d   :  { %2058 = vmatprep.subr.bf16.mxu1 %v2522_v0  ;;  %255 = vmatprep.subr.bf16.mxu0 %v2114_v8  ;;  %v2134_v23 = vld [vmem:[#allocation5 + $0x4] ss:$12 sps:$4 sm:$0xff]   ;;  %v2136_v24 = vld [vmem:[#allocation5 + $0x8] ss:$12 sps:$4 sm:$0xff]   ;;  %v2137_v25 = vld [vmem:[#allocation5] ss:$12 sps:$4 sm:$0xff]  }
  0x3e   :  { %v2140_v26 = vld [vmem:[#allocation8 + $0x18c] ss:$28 sps:$4 sm:$0xff]   ;;  %v73_v27 = vld [vmem:[#allocation2] sm:$0xf]  ;;  %v2143_v31 = vld [vmem:[#allocation8 + $0x154] ss:$28 sps:$4 sm:$0xff]  }
  0x3f   :  { %v2164_v28 = vld [vmem:[#allocation8 + $0x50c] ss:$28 sps:$4 sm:$0xff]   ;;  %v2170_v32 = vld [vmem:[#allocation8 + $0x4d4] ss:$28 sps:$4 sm:$0xff]   ;;  %v2176_v35 = vld [vmem:[#allocation8 + $0x49c] ss:$28 sps:$4 sm:$0xff]  }
  0x40   :  { %2059 = vmatpush3.bf16.msra.mxu1 %v2116_v9  ;;  %256 = vmatpush1.bf16.msra.mxu0 %v2117_v10  ;;  %v2162_v29 = vld [vmem:[#allocation8 + $0x508] ss:$28 sps:$4 sm:$0xff]   ;;  %v2141_v33 = vld [vmem:[#allocation8 + $0x150] ss:$28 sps:$4 sm:$0xff]   ;;  %v2146_v36 = vld [vmem:[#allocation8 + $0x11c] ss:$28 sps:$4 sm:$0xff]  }
  0x41   :  { %2060 = vmatprep.subr.bf16.mxu1 %v2522_v0  ;;  %257 = vmatprep.subr.bf16.mxu0 %v2118_v11  ;;  %v2138_v30 = vld [vmem:[#allocation8 + $0x188] ss:$28 sps:$4 sm:$0xff]   ;;  %v2168_v34 = vld [vmem:[#allocation8 + $0x4d0] ss:$28 sps:$4 sm:$0xff]   ;;  %v2144_v37 = vld [vmem:[#allocation8 + $0x118] ss:$28 sps:$4 sm:$0xff]  }
  0x42   :  { %v2174_v38 = vld [vmem:[#allocation8 + $0x498] ss:$28 sps:$4 sm:$0xff]   ;;  %v2182_v39 = vld [vmem:[#allocation8 + $0x464] ss:$28 sps:$4 sm:$0xff]   ;;  %v2188_v43 = vld [vmem:[#allocation8 + $0x42c] ss:$28 sps:$4 sm:$0xff]  }
  0x43   :  { %v2149_v40 = vld [vmem:[#allocation8 + $0xe4] ss:$28 sps:$4 sm:$0xff]   ;;  %v2152_v44 = vld [vmem:[#allocation8 + $0xac] ss:$28 sps:$4 sm:$0xff]   ;;  %v2155_v47 = vld [vmem:[#allocation8 + $0x74] ss:$28 sps:$4 sm:$0xff]  }
  0x44   :  { %2061 = vmatpush3.bf16.msra.mxu1 %v2120_v12  ;;  %258 = vmatpush1.bf16.msra.mxu0 %v2121_v13  ;;  %v2147_v41 = vld [vmem:[#allocation8 + $0xe0] ss:$28 sps:$4 sm:$0xff]   ;;  %v2150_v45 = vld [vmem:[#allocation8 + $0xa8] ss:$28 sps:$4 sm:$0xff]   ;;  %v2194_v48 = vld [vmem:[#allocation8 + $0x3f4] ss:$28 sps:$4 sm:$0xff]  }
  0x45   :  { %2062 = vmatprep.subr.bf16.mxu1 %v2522_v0  ;;  %259 = vmatprep.subr.bf16.mxu0 %v2122_v14  ;;  %v2180_v42 = vld [vmem:[#allocation8 + $0x460] ss:$28 sps:$4 sm:$0xff]   ;;  %v2186_v46 = vld [vmem:[#allocation8 + $0x428] ss:$28 sps:$4 sm:$0xff]   ;;  %v2192_v49 = vld [vmem:[#allocation8 + $0x3f0] ss:$28 sps:$4 sm:$0xff]  }
  0x46   :  { %v2153_v50 = vld [vmem:[#allocation8 + $0x70] ss:$28 sps:$4 sm:$0xff]   ;;  %v2200_v51 = vld [vmem:[#allocation8 + $0x3bc] ss:$28 sps:$4 sm:$0xff]   ;;  %v2161_v55 = vld [vmem:[#allocation8 + $0x4] ss:$28 sps:$4 sm:$0xff]  }
  0x47   :  { %v2158_v52 = vld [vmem:[#allocation8 + $0x3c] ss:$28 sps:$4 sm:$0xff]   ;;  %v2167_v57 = vld [vmem:[#allocation8 + $0x34c] ss:$28 sps:$4 sm:$0xff]   ;;  %v2173_v59 = vld [vmem:[#allocation8 + $0x314] ss:$28 sps:$4 sm:$0xff]  }
  0x48   :  { %2063 = vmatpush3.bf16.msra.mxu1 %v2124_v15  ;;  %260 = vmatpush1.bf16.msra.mxu0 %v2125_v16  ;;  %v2198_v53 = vld [vmem:[#allocation8 + $0x3b8] ss:$28 sps:$4 sm:$0xff]   ;;  %v2159_v56 = vld [vmem:[#allocation8] ss:$28 sps:$4 sm:$0xff]   ;;  %v2165_v58 = vld [vmem:[#allocation8 + $0x348] ss:$28 sps:$4 sm:$0xff]   ;;  %v108_v15 = vlaneseq }
  0x49   :  { %2064 = vmatprep.subr.bf16.mxu1 %v2522_v0  ;;  %261 = vmatprep.subr.bf16.mxu0 %v2126_v17  ;;  %v2156_v54 = vld [vmem:[#allocation8 + $0x38] ss:$28 sps:$4 sm:$0xff]   ;;  %v2171_v60 = vld [vmem:[#allocation8 + $0x310] ss:$28 sps:$4 sm:$0xff]   ;;  %v2185_v63 = vld [vmem:[#allocation8 + $0x2a4] ss:$28 sps:$4 sm:$0xff]  }
  0x4a   :  { %v2179_v61 = vld [vmem:[#allocation8 + $0x2dc] ss:$28 sps:$4 sm:$0xff]   ;;  %v2191_v3 = vld [vmem:[#allocation8 + $0x26c] ss:$28 sps:$4 sm:$0xff]   ;;  %v2197_v5 = vld [vmem:[#allocation8 + $0x234] ss:$28 sps:$4 sm:$0xff]  }
  0x4b   :  { %v2177_v62 = vld [vmem:[#allocation8 + $0x2d8] ss:$28 sps:$4 sm:$0xff]   ;;  %v2183_v2 = vld [vmem:[#allocation8 + $0x2a0] ss:$28 sps:$4 sm:$0xff]   ;;  %v2189_v4 = vld [vmem:[#allocation8 + $0x268] ss:$28 sps:$4 sm:$0xff]  }
  0x4c   :  { %2065 = vmatpush3.bf16.msra.mxu1 %v2128_v18  ;;  %262 = vmatpush1.bf16.msra.mxu0 %v2129_v19  ;;  %v2195_v6 = vld [vmem:[#allocation8 + $0x230] ss:$28 sps:$4 sm:$0xff]   ;;  %v2203_v7 = vld [vmem:[#allocation8 + $0x1fc] ss:$28 sps:$4 sm:$0xff]   ;;  %v2206_v8 = vld [vmem:[#allocation8 + $0x384] ss:$28 sps:$4 sm:$0xff]  }
  0x4d   :  { %2066 = vmatprep.subr.bf16.mxu1 %v2522_v0  ;;  %263 = vmatprep.subr.bf16.mxu0 %v2130_v20  ;;  %v2201_v9 = vld [vmem:[#allocation8 + $0x1f8] ss:$28 sps:$4 sm:$0xff]   ;;  %v2204_v10 = vld [vmem:[#allocation8 + $0x380] ss:$28 sps:$4 sm:$0xff]   ;;  %v2580_v16 = vshrl.u32 %v108_v15, 7 }
  0x4e   :  { %v2209_v11 = vld [vmem:[#allocation8 + $0x1c4] ss:$28 sps:$4 sm:$0xff]   ;;  %v2212_v12 = vld [vmem:[#allocation8 + $0x194] ss:$28 sps:$4 sm:$0xff]   ;;  %v106_v18 = vld [vmem:[#allocation7] sm:$0x7] }
  0x4f   :  { %v2207_v13 = vld [vmem:[#allocation8 + $0x1c0] ss:$28 sps:$4 sm:$0xff]   ;;  %v2218_v14 = vld [vmem:[#allocation8 + $0x514] ss:$28 sps:$4 sm:$0xff]   ;;  %v118_v17 = vsub.s32 2, %v2580_v16  ;;  %v110_v19 = vsub.s32 0, %v2580_v16 }
  0x50   :  { %2067 = vmatpush3.bf16.msra.mxu1 %v2132_v21  ;;  %264 = vmatpush1.bf16.msra.mxu0 %v2133_v22  ;;  %v114_v20 = vsub.s32 1, %v2580_v16  ;;  %v2266_v15 = vld [vmem:[#allocation8 + $0x19c] ss:$28 sps:$4 sm:$0xff]  }
  0x51   :  { %2068 = vmatprep.subr.bf16.mxu1 %v2522_v0  ;;  %265 = vmatprep.subr.bf16.mxu0 %v2134_v23  ;;  %v119_v21 = vrot.slane %v106_v18, %v118_v17  ;;  %v111_v22 = vrot.slane %v106_v18, %v110_v19 }
  0x54   :  { %2069 = vmatpush3.bf16.msra.mxu1 %v2136_v24  ;;  %266 = vmatpush1.bf16.msra.mxu0 %v2137_v25  ;;  %v115_v24 = vrot.slane %v106_v18, %v114_v20  ;;  %v2261_v18 = vld [vmem:[#allocation8 + $0x318] ss:$28 sps:$4 sm:$0xff]  }
  0x55   :  { %1478 = vmatprep.subr.bf16.mxu1 %v2164_v28  ;;  %1437 = vmatprep.subr.bf16.mxu0 %v2140_v26 }
  0x57   :  { %2071 = vmatmul.mubr.bf16.vlgmr.msra.gmra.mxu1 %v73_v27  ;;  %284 = vmatmul.mubr.bf16.vlgmr.msra.gmra.mxu0 %v73_v27 }
  0x58   :  { %1479 = vmatpush1.bf16.msra.mxu1 %v2162_v29  ;;  %1438 = vmatpush1.bf16.msra.mxu0 %v2138_v30 }
  0x59   :  { %1480 = vmatprep.subr.bf16.mxu1 %v2170_v32  ;;  %1439 = vmatprep.subr.bf16.mxu0 %v2143_v31 }
  0x5a   :  { %1510 = vmatprep.mubr.bf16.mxu1 %v2524_v1 }
  0x5c   :  { %1481 = vmatpush1.bf16.msra.mxu1 %v2168_v34  ;;  %1440 = vmatpush1.bf16.msra.mxu0 %v2141_v33 }
  0x5d   :  { %1482 = vmatprep.subr.bf16.mxu1 %v2176_v35  ;;  %1441 = vmatprep.subr.bf16.mxu0 %v2146_v36  ;;  %v2210_v36 = vld [vmem:[#allocation8 + $0x190] ss:$28 sps:$4 sm:$0xff]  }
  0x60   :  { %1483 = vmatpush1.bf16.msra.mxu1 %v2174_v38  ;;  %1442 = vmatpush1.bf16.msra.mxu0 %v2144_v37 }
  0x61   :  { %1484 = vmatprep.subr.bf16.mxu1 %v2182_v39  ;;  %1443 = vmatprep.subr.bf16.mxu0 %v2149_v40  ;;  %v2215_v40 = vld [vmem:[#allocation8 + $0x15c] ss:$28 sps:$4 sm:$0xff]  }
  0x64   :  { %1485 = vmatpush1.bf16.msra.mxu1 %v2180_v42  ;;  %1444 = vmatpush1.bf16.msra.mxu0 %v2147_v41 }
  0x65   :  { %1486 = vmatprep.subr.bf16.mxu1 %v2188_v43  ;;  %1445 = vmatprep.subr.bf16.mxu0 %v2152_v44 }
  0x68   :  { %1487 = vmatpush1.bf16.msra.mxu1 %v2186_v46  ;;  %1446 = vmatpush1.bf16.msra.mxu0 %v2150_v45  ;;  %v2213_v45 = vld [vmem:[#allocation8 + $0x158] ss:$28 sps:$4 sm:$0xff]   ;;  %v2216_v46 = vld [vmem:[#allocation8 + $0x510] ss:$28 sps:$4 sm:$0xff]  }
  0x69   :  { %1488 = vmatprep.subr.bf16.mxu1 %v2194_v48  ;;  %1447 = vmatprep.subr.bf16.mxu0 %v2155_v47  ;;  %v2221_v48 = vld [vmem:[#allocation8 + $0x124] ss:$28 sps:$4 sm:$0xff]  }
  0x6c   :  { %1489 = vmatpush1.bf16.msra.mxu1 %v2192_v49  ;;  %1448 = vmatpush1.bf16.msra.mxu0 %v2153_v50  ;;  %v2224_v49 = vld [vmem:[#allocation8 + $0x4dc] ss:$28 sps:$4 sm:$0xff]  }
  0x6d   :  { %1490 = vmatprep.subr.bf16.mxu1 %v2200_v51  ;;  %1449 = vmatprep.subr.bf16.mxu0 %v2158_v52  ;;  %v2219_v50 = vld [vmem:[#allocation8 + $0x120] ss:$28 sps:$4 sm:$0xff]   ;;  %v2222_v51 = vld [vmem:[#allocation8 + $0x4d8] ss:$28 sps:$4 sm:$0xff]   ;;  %v2227_v52 = vld [vmem:[#allocation8 + $0xec] ss:$28 sps:$4 sm:$0xff]  }
  0x70   :  { %1491 = vmatpush1.bf16.msra.mxu1 %v2198_v53  ;;  %1450 = vmatpush1.bf16.msra.mxu0 %v2156_v54  ;;  %v2230_v53 = vld [vmem:[#allocation8 + $0x4a4] ss:$28 sps:$4 sm:$0xff]  }
  0x71   :  { %1451 = vmatprep.subr.bf16.mxu0 %v2161_v55  ;;  %1492 = vmatprep.subr.bf16.mxu1 %v2206_v8  ;;  %v2225_v54 = vld [vmem:[#allocation8 + $0xe8] ss:$28 sps:$4 sm:$0xff]   ;;  %v2228_v55 = vld [vmem:[#allocation8 + $0x4a0] ss:$28 sps:$4 sm:$0xff]  }
  0x72   :  { %v2249_v8 = vld [vmem:[#allocation8 + $0x8] ss:$28 sps:$4 sm:$0xff]  }
  0x74   :  { %1452 = vmatpush1.bf16.msra.mxu0 %v2159_v56  ;;  %1493 = vmatpush1.bf16.msra.mxu1 %v2204_v10  ;;  %v2233_v56 = vld [vmem:[#allocation8 + $0xb4] ss:$28 sps:$4 sm:$0xff]  }
  0x75   :  { %1453 = vmatprep.subr.bf16.mxu0 %v2167_v57  ;;  %1519 = vmatprep.subr.bf16.mxu1 %v2212_v12  ;;  %v2236_v57 = vld [vmem:[#allocation8 + $0x46c] ss:$28 sps:$4 sm:$0xff]   ;;  %v2257_v10 = vld [vmem:[#allocation8 + $0x354] ss:$28 sps:$4 sm:$0xff]  }
  0x76   :  { %v2255_v12 = vld [vmem:[#allocation8 + $0x350] ss:$28 sps:$4 sm:$0xff]  }
  0x78   :  { %1454 = vmatpush2.bf16.msra.mxu0 %v2165_v58  ;;  %v2231_v58 = vld [vmem:[#allocation8 + $0xb0] ss:$28 sps:$4 sm:$0xff]  }
  0x79   :  { %1455 = vmatprep.subr.bf16.mxu0 %v2173_v59  ;;  %v2234_v59 = vld [vmem:[#allocation8 + $0x468] ss:$28 sps:$4 sm:$0xff]  }
  0x7c   :  { %1456 = vmatpush2.bf16.msra.mxu0 %v2171_v60  ;;  %v2239_v60 = vld [vmem:[#allocation8 + $0x7c] ss:$28 sps:$4 sm:$0xff]  }
  0x7d   :  { %1457 = vmatprep.subr.bf16.mxu0 %v2179_v61  ;;  %v2242_v61 = vld [vmem:[#allocation8 + $0x434] ss:$28 sps:$4 sm:$0xff]  }
  0x80   :  { %1458 = vmatpush2.bf16.msra.mxu0 %v2177_v62  ;;  %v2237_v62 = vld [vmem:[#allocation8 + $0x78] ss:$28 sps:$4 sm:$0xff]  }
  0x81   :  { %1459 = vmatprep.subr.bf16.mxu0 %v2185_v63  ;;  %v2240_v63 = vld [vmem:[#allocation8 + $0x430] ss:$28 sps:$4 sm:$0xff]  }
  0x84   :  { %1460 = vmatpush2.bf16.msra.mxu0 %v2183_v2  ;;  %v2245_v2 = vld [vmem:[#allocation8 + $0x44] ss:$28 sps:$4 sm:$0xff]  }
  0x85   :  { %1461 = vmatprep.subr.bf16.mxu0 %v2191_v3  ;;  %v2248_v3 = vld [vmem:[#allocation8 + $0x3fc] ss:$28 sps:$4 sm:$0xff]  }
  0x88   :  { %1462 = vmatpush2.bf16.msra.mxu0 %v2189_v4  ;;  %v2243_v4 = vld [vmem:[#allocation8 + $0x40] ss:$28 sps:$4 sm:$0xff]  }
  0x89   :  { %1463 = vmatprep.subr.bf16.mxu0 %v2197_v5  ;;  %v2246_v5 = vld [vmem:[#allocation8 + $0x3f8] ss:$28 sps:$4 sm:$0xff]  }
  0x8c   :  { %1464 = vmatpush2.bf16.msra.mxu0 %v2195_v6  ;;  %v2251_v6 = vld [vmem:[#allocation8 + $0xc] ss:$28 sps:$4 sm:$0xff]  }
  0x8d   :  { %1465 = vmatprep.subr.bf16.mxu0 %v2203_v7  ;;  %v2254_v7 = vld [vmem:[#allocation8 + $0x3c4] ss:$28 sps:$4 sm:$0xff]  }
  0x90   :  { %1466 = vmatpush2.bf16.msra.mxu0 %v2201_v9  ;;  %v2252_v9 = vld [vmem:[#allocation8 + $0x3c0] ss:$28 sps:$4 sm:$0xff]  }
  0x91   :  { %1467 = vmatprep.subr.bf16.mxu0 %v2209_v11  ;;  %v2260_v11 = vld [vmem:[#allocation8 + $0x38c] ss:$28 sps:$4 sm:$0xff]  }
  0x94   :  { %1468 = vmatpush2.bf16.msra.mxu0 %v2207_v13  ;;  %v2258_v13 = vld [vmem:[#allocation8 + $0x388] ss:$28 sps:$4 sm:$0xff]  }
  0x95   :  { %1560 = vmatprep.subr.bf16.mxu0 %v2218_v14  ;;  %v2263_v14 = vld [vmem:[#allocation8 + $0x31c] ss:$28 sps:$4 sm:$0xff]  }
 0x117   :  { %v326_v23 = vpop.f32.mrf.mxu1  ;;  %v285_v26 = vpop.f32.mrf.mxu0 }
 0x118   :  { %v327_v25 = vadd.f32 %v326_v23, %v119_v21  ;;  %v286_v27 = vadd.f32 %v285_v26, %v111_v22  ;;  %v2264_v21 = vld [vmem:[#allocation8 + $0x198] ss:$28 sps:$4 sm:$0xff]   ;;  %v2269_v22 = vld [vmem:[#allocation8 + $0x2e4] ss:$28 sps:$4 sm:$0xff]   ;;  %v2275_v26 = vld [vmem:[#allocation8 + $0x2ac] ss:$28 sps:$4 sm:$0xff]  }
 0x119   :  { %v2072_v28 = vpop.f32.mrf.mxu1  ;;  %v287_v30 = vpop.f32.mrf.mxu0  ;;  %v2272_v23 = vld [vmem:[#allocation8 + $0x164] ss:$28 sps:$4 sm:$0xff]  }
 0x11a   :  { %vm334_vm1 = vcmp.gt.f32.partialorder %v327_v25, 0.0  ;;  %v337_v29 = vmul.f32 0.2, %v327_v25  ;;  %vm332_vm2 = vcmp.gt.f32.partialorder %v286_v27, 0.0  ;;  %v335_v31 = vmul.f32 0.2, %v286_v27 }
 0x11b   :  { %v288_v32 = vadd.f32 %v287_v30, %v115_v24  ;;  %v329_v33 = vpop.f32.mrf.mxu1  ;;  %v289_v35 = vpop.f32.mrf.mxu0  ;;  %v2267_v24 = vld [vmem:[#allocation8 + $0x2e0] ss:$28 sps:$4 sm:$0xff]   ;;  %v2273_v28 = vld [vmem:[#allocation8 + $0x2a8] ss:$28 sps:$4 sm:$0xff]   ;;  %v2281_v30 = vld [vmem:[#allocation8 + $0x274] ss:$28 sps:$4 sm:$0xff]  }
 0x11c   :  { %v340_v34 = vsel %vm334_vm1, %v327_v25, %v337_v29  ;;  %v338_v41 = vsel %vm332_vm2, %v286_v27, %v335_v31  ;;  %v2270_v25 = vld [vmem:[#allocation8 + $0x160] ss:$28 sps:$4 sm:$0xff]   ;;  %v2278_v27 = vld [vmem:[#allocation8 + $0x12c] ss:$28 sps:$4 sm:$0xff]   ;;  %v2284_v31 = vld [vmem:[#allocation8 + $0xf4] ss:$28 sps:$4 sm:$0xff]  }
 0x11d   :  { %v2591_v37 = vpack.c.bf16 %v340_v34, %v340_v34  ;;  %vm333_vm3 = vcmp.gt.f32.partialorder %v288_v32, 0.0  ;;  %v336_v38 = vmul.f32 0.2, %v288_v32  ;;  %v2073_v39 = vpop.f32.mrf.mxu1  ;;  %v290_v42 = vpop.f32.mrf.mxu0  ;;  %v2596_v47 = vpack.c.bf16 %v338_v41, %v338_v41  ;;  %v2276_v29 = vld [vmem:[#allocation8 + $0x128] ss:$28 sps:$4 sm:$0xff]  }
 0x11e   :  { %v2282_v33 = vld [vmem:[#allocation8 + $0xf0] ss:$28 sps:$4 sm:$0xff]   ;;  %v2287_v34 = vld [vmem:[#allocation8 + $0x23c] ss:$28 sps:$4 sm:$0xff]   ;;  %v2293_v39 = vld [vmem:[#allocation8 + $0x204] ss:$28 sps:$4 sm:$0xff]  }
 0x11f   :  { %v339_v43 = vsel %vm333_vm3, %v288_v32, %v336_v38  ;;  %1511 = vmatmul.mubr.bf16.vlgmr.msra.gmra.mxu1 %v2591_v37  ;;  %v2279_v32 = vld [vmem:[#allocation8 + $0x270] ss:$28 sps:$4 sm:$0xff]   ;;  %v2290_v35 = vld [vmem:[#allocation8 + $0xbc] ss:$28 sps:$4 sm:$0xff]  }
 0x120   :  { %v2594_v44 = vpack.c.bf16 %v339_v43, %v339_v43  ;;  %1520 = vmatpush1.bf16.msra.mxu1 %v2210_v36  ;;  %v2285_v36 = vld [vmem:[#allocation8 + $0x238] ss:$28 sps:$4 sm:$0xff]   ;;  %v2291_v41 = vld [vmem:[#allocation8 + $0x200] ss:$28 sps:$4 sm:$0xff]   ;;  %v2299_v43 = vld [vmem:[#allocation8 + $0x1cc] ss:$28 sps:$4 sm:$0xff]  }
 0x121   :  { %1521 = vmatprep.subr.bf16.mxu1 %v2215_v40  ;;  %v2288_v38 = vld [vmem:[#allocation8 + $0xb8] ss:$28 sps:$4 sm:$0xff]   ;;  %v2296_v40 = vld [vmem:[#allocation8 + $0x84] ss:$28 sps:$4 sm:$0xff]  }
 0x122   :  { %1469 = vmatprep.mubr.bf16.mxu0 %v2594_v44  ;;  %1551 = vmatprep.mubr.bf16.mxu1 %v2594_v44  ;;  %v2294_v42 = vld [vmem:[#allocation8 + $0x80] ss:$28 sps:$4 sm:$0xff]  }
 0x123   :  { %1470 = vmatmul.mubr.bf16.vlgmr.msra.gmra.mxu0 %v2596_v47 }
 0x124   :  { %1522 = vmatpush1.bf16.msra.mxu1 %v2213_v45  ;;  %1561 = vmatpush1.bf16.msra.mxu0 %v2216_v46  ;;  %v2302_v45 = vld [vmem:[#allocation8 + $0x4c] ss:$28 sps:$4 sm:$0xff]  }
 0x125   :  { %1523 = vmatprep.subr.bf16.mxu1 %v2221_v48  ;;  %1562 = vmatprep.subr.bf16.mxu0 %v2224_v49  ;;  %v2297_v46 = vld [vmem:[#allocation8 + $0x1c8] ss:$28 sps:$4 sm:$0xff]   ;;  %v2305_v49 = vld [vmem:[#allocation8 + $0x14] ss:$28 sps:$4 sm:$0xff]  }
 0x126   :  { %1592 = vmatprep.mubr.bf16.mxu0 %v2524_v1  ;;  %v2300_v48 = vld [vmem:[#allocation8 + $0x48] ss:$28 sps:$4 sm:$0xff]  }
 0x128   :  { %1524 = vmatpush1.bf16.msra.mxu1 %v2219_v50  ;;  %1563 = vmatpush1.bf16.msra.mxu0 %v2222_v51  ;;  %v2308_v50 = vld [vmem:[#allocation8 + $0x51c] ss:$28 sps:$4 sm:$0xff]   ;;  %v2303_v51 = vld [vmem:[#allocation8 + $0x10] ss:$28 sps:$4 sm:$0xff]  }
 0x129   :  { %1525 = vmatprep.subr.bf16.mxu1 %v2227_v52  ;;  %1564 = vmatprep.subr.bf16.mxu0 %v2230_v53  ;;  %v2306_v52 = vld [vmem:[#allocation8 + $0x518] ss:$28 sps:$4 sm:$0xff]  }
 0x12a   :  { %v2311_v53 = vld [vmem:[#allocation8 + $0x35c] ss:$28 sps:$4 sm:$0xff]  }
 0x12c   :  { %1526 = vmatpush1.bf16.msra.mxu1 %v2225_v54  ;;  %1565 = vmatpush1.bf16.msra.mxu0 %v2228_v55  ;;  %v2314_v54 = vld [vmem:[#allocation8 + $0x4e4] ss:$28 sps:$4 sm:$0xff]   ;;  %v2309_v55 = vld [vmem:[#allocation8 + $0x358] ss:$28 sps:$4 sm:$0xff]  }
 0x12d   :  { %1527 = vmatprep.subr.bf16.mxu1 %v2233_v56  ;;  %1566 = vmatprep.subr.bf16.mxu0 %v2236_v57  ;;  %v2312_v56 = vld [vmem:[#allocation8 + $0x4e0] ss:$28 sps:$4 sm:$0xff]  }
 0x12e   :  { %v2317_v57 = vld [vmem:[#allocation8 + $0x324] ss:$28 sps:$4 sm:$0xff]  }
 0x130   :  { %1528 = vmatpush1.bf16.msra.mxu1 %v2231_v58  ;;  %1567 = vmatpush1.bf16.msra.mxu0 %v2234_v59  ;;  %v2320_v58 = vld [vmem:[#allocation8 + $0x4ac] ss:$28 sps:$4 sm:$0xff]   ;;  %v2315_v59 = vld [vmem:[#allocation8 + $0x320] ss:$28 sps:$4 sm:$0xff]  }
 0x131   :  { %1529 = vmatprep.subr.bf16.mxu1 %v2239_v60  ;;  %1568 = vmatprep.subr.bf16.mxu0 %v2242_v61  ;;  %v2318_v60 = vld [vmem:[#allocation8 + $0x4a8] ss:$28 sps:$4 sm:$0xff]  }
 0x132   :  { %v2323_v61 = vld [vmem:[#allocation8 + $0x2ec] ss:$28 sps:$4 sm:$0xff]  }
 0x134   :  { %1530 = vmatpush1.bf16.msra.mxu1 %v2237_v62  ;;  %1569 = vmatpush1.bf16.msra.mxu0 %v2240_v63  ;;  %v2326_v62 = vld [vmem:[#allocation8 + $0x474] ss:$28 sps:$4 sm:$0xff]   ;;  %v2321_v63 = vld [vmem:[#allocation8 + $0x2e8] ss:$28 sps:$4 sm:$0xff]  }
 0x135   :  { %1531 = vmatprep.subr.bf16.mxu1 %v2245_v2  ;;  %1570 = vmatprep.subr.bf16.mxu0 %v2248_v3  ;;  %v2324_v2 = vld [vmem:[#allocation8 + $0x470] ss:$28 sps:$4 sm:$0xff]  }
 0x136   :  { %v2329_v3 = vld [vmem:[#allocation8 + $0x2b4] ss:$28 sps:$4 sm:$0xff]  }
 0x138   :  { %1532 = vmatpush1.bf16.msra.mxu1 %v2243_v4  ;;  %1571 = vmatpush1.bf16.msra.mxu0 %v2246_v5  ;;  %v2332_v4 = vld [vmem:[#allocation8 + $0x43c] ss:$28 sps:$4 sm:$0xff]   ;;  %v2327_v5 = vld [vmem:[#allocation8 + $0x2b0] ss:$28 sps:$4 sm:$0xff]  }
 0x139   :  { %1533 = vmatprep.subr.bf16.mxu1 %v2251_v6  ;;  %1572 = vmatprep.subr.bf16.mxu0 %v2254_v7  ;;  %v2335_v6 = vld [vmem:[#allocation8 + $0x27c] ss:$28 sps:$4 sm:$0xff]   ;;  %v2338_v7 = vld [vmem:[#allocation8 + $0x404] ss:$28 sps:$4 sm:$0xff]  }
 0x13c   :  { %1534 = vmatpush1.bf16.msra.mxu1 %v2249_v8  ;;  %1573 = vmatpush1.bf16.msra.mxu0 %v2252_v9  ;;  %v2333_v8 = vld [vmem:[#allocation8 + $0x278] ss:$28 sps:$4 sm:$0xff]   ;;  %v2336_v9 = vld [vmem:[#allocation8 + $0x400] ss:$28 sps:$4 sm:$0xff]  }
 0x13d   :  { %1535 = vmatprep.subr.bf16.mxu1 %v2257_v10  ;;  %1574 = vmatprep.subr.bf16.mxu0 %v2260_v11  ;;  %v2341_v10 = vld [vmem:[#allocation8 + $0x244] ss:$28 sps:$4 sm:$0xff]   ;;  %v2344_v11 = vld [vmem:[#allocation8 + $0x3cc] ss:$28 sps:$4 sm:$0xff]  }
 0x140   :  { %1536 = vmatpush2.bf16.msra.mxu1 %v2255_v12  ;;  %1575 = vmatpush1.bf16.msra.mxu0 %v2258_v13  ;;  %v2339_v12 = vld [vmem:[#allocation8 + $0x240] ss:$28 sps:$4 sm:$0xff]   ;;  %v2342_v13 = vld [vmem:[#allocation8 + $0x3c8] ss:$28 sps:$4 sm:$0xff]  }
 0x141   :  { %1537 = vmatprep.subr.bf16.mxu1 %v2263_v14  ;;  %1601 = vmatprep.subr.bf16.mxu0 %v2266_v15  ;;  %v2347_v14 = vld [vmem:[#allocation8 + $0x20c] ss:$28 sps:$4 sm:$0xff]   ;;  %v2350_v15 = vld [vmem:[#allocation8 + $0x394] ss:$28 sps:$4 sm:$0xff]  }
 0x143   :  { %1593 = vmatmul.mubr.bf16.vlgmr.msra.gmra.mxu0 %v2591_v37 }
 0x144   :  { %1538 = vmatpush2.bf16.msra.mxu1 %v2261_v18  ;;  %1602 = vmatpush1.bf16.msra.mxu0 %v2264_v21  ;;  %v2345_v18 = vld [vmem:[#allocation8 + $0x208] ss:$28 sps:$4 sm:$0xff]   ;;  %v2348_v21 = vld [vmem:[#allocation8 + $0x390] ss:$28 sps:$4 sm:$0xff]  }
 0x145   :  { %1633 = vmatprep.mubr.bf16.mxu0 %v2594_v44  ;;  %1539 = vmatprep.subr.bf16.mxu1 %v2269_v22  ;;  %v2353_v22 = vld [vmem:[#allocation8 + $0x1d4] ss:$28 sps:$4 sm:$0xff]  }
 0x146   :  { %1603 = vmatprep.subr.bf16.mxu0 %v2272_v23  ;;  %v2354_v23 = vld [vmem:[#allocation8 + $0x360] ss:$28 sps:$4 sm:$0xff]  }
 0x148   :  { %1540 = vmatpush2.bf16.msra.mxu1 %v2267_v24  ;;  %1604 = vmatpush1.bf16.msra.mxu0 %v2270_v25  ;;  %v2351_v24 = vld [vmem:[#allocation8 + $0x1d0] ss:$28 sps:$4 sm:$0xff]   ;;  %v2355_v25 = vld [vmem:[#allocation8 + $0x1a0] ss:$28 sps:$4 sm:$0xff]  }
 0x149   :  { %1541 = vmatprep.subr.bf16.mxu1 %v2275_v26  ;;  %1605 = vmatprep.subr.bf16.mxu0 %v2278_v27  ;;  %v2356_v26 = vld [vmem:[#allocation8 + $0x328] ss:$28 sps:$4 sm:$0xff]  }
 0x14a   :  { %v2357_v27 = vld [vmem:[#allocation8 + $0x168] ss:$28 sps:$4 sm:$0xff]  }
 0x14c   :  { %1542 = vmatpush2.bf16.msra.mxu1 %v2273_v28  ;;  %1606 = vmatpush1.bf16.msra.mxu0 %v2276_v29  ;;  %v2358_v28 = vld [vmem:[#allocation8 + $0x520] ss:$28 sps:$4 sm:$0xff]   ;;  %v2359_v29 = vld [vmem:[#allocation8 + $0x2f0] ss:$28 sps:$4 sm:$0xff]  }
 0x14d   :  { %1543 = vmatprep.subr.bf16.mxu1 %v2281_v30  ;;  %1607 = vmatprep.subr.bf16.mxu0 %v2284_v31  ;;  %v2360_v30 = vld [vmem:[#allocation8 + $0x130] ss:$28 sps:$4 sm:$0xff]   ;;  %v2361_v31 = vld [vmem:[#allocation8 + $0x4e8] ss:$28 sps:$4 sm:$0xff]  }
 0x150   :  { %1544 = vmatpush2.bf16.msra.mxu1 %v2279_v32  ;;  %1608 = vmatpush1.bf16.msra.mxu0 %v2282_v33  ;;  %v2362_v32 = vld [vmem:[#allocation8 + $0x2b8] ss:$28 sps:$4 sm:$0xff]   ;;  %v2364_v33 = vld [vmem:[#allocation8 + $0x4b0] ss:$28 sps:$4 sm:$0xff]  }
 0x151   :  { %1545 = vmatprep.subr.bf16.mxu1 %v2287_v34  ;;  %1609 = vmatprep.subr.bf16.mxu0 %v2290_v35  ;;  %v2365_v34 = vld [vmem:[#allocation8 + $0x280] ss:$28 sps:$4 sm:$0xff]  }
 0x152   :  { %v2366_v35 = vld [vmem:[#allocation8 + $0xc0] ss:$28 sps:$4 sm:$0xff]  }
 0x154   :  { %1546 = vmatpush2.bf16.msra.mxu1 %v2285_v36  ;;  %1610 = vmatpush1.bf16.msra.mxu0 %v2288_v38  ;;  %v2367_v36 = vld [vmem:[#allocation8 + $0x478] ss:$28 sps:$4 sm:$0xff]   ;;  %v2368_v38 = vld [vmem:[#allocation8 + $0x248] ss:$28 sps:$4 sm:$0xff]  }
 0x155   :  { %1547 = vmatprep.subr.bf16.mxu1 %v2293_v39  ;;  %1611 = vmatprep.subr.bf16.mxu0 %v2296_v40  ;;  %v2369_v39 = vld [vmem:[#allocation8 + $0x88] ss:$28 sps:$4 sm:$0xff]   ;;  %v2370_v40 = vld [vmem:[#allocation8 + $0x440] ss:$28 sps:$4 sm:$0xff]  }
 0x158   :  { %1548 = vmatpush2.bf16.msra.mxu1 %v2291_v41  ;;  %1612 = vmatpush1.bf16.msra.mxu0 %v2294_v42  ;;  %v2371_v41 = vld [vmem:[#allocation8 + $0x210] ss:$28 sps:$4 sm:$0xff]  }
 0x159   :  { %1549 = vmatprep.subr.bf16.mxu1 %v2299_v43  ;;  %1613 = vmatprep.subr.bf16.mxu0 %v2302_v45  ;;  %v2372_v42 = vld [vmem:[#allocation8 + $0x50] ss:$28 sps:$4 sm:$0xff]   ;;  %v2373_v43 = vld [vmem:[#allocation8 + $0x408] ss:$28 sps:$4 sm:$0xff]   ;;  %v2374_v45 = vld [vmem:[#allocation8 + $0x1d8] ss:$28 sps:$4 sm:$0xff]  }
 0x15c   :  { %1550 = vmatpush2.bf16.msra.mxu1 %v2297_v46  ;;  %1614 = vmatpush1.bf16.msra.mxu0 %v2300_v48  ;;  %v2375_v46 = vld [vmem:[#allocation8 + $0x18] ss:$28 sps:$4 sm:$0xff]   ;;  %v2376_v48 = vld [vmem:[#allocation8 + $0x3d0] ss:$28 sps:$4 sm:$0xff]  }
 0x15d   :  { %1615 = vmatprep.subr.bf16.mxu0 %v2305_v49  ;;  %1642 = vmatprep.subr.bf16.mxu1 %v2308_v50  ;;  %v2377_v49 = vld [vmem:[#allocation8 + $0x398] ss:$28 sps:$4 sm:$0xff]  }
 0x15e   :  { %v2624_v50 = vld [vmem:[%s2650_s4] sm:$0xff]  ;;  %s2525_s4 = smov [#allocation10]  }
 0x15f   :  { %1552 = vmatmul.mubr.bf16.vlgmr.msra.gmra.mxu1 %v2596_v47  ;;  %s1811_s16 = sshll.u32 %s2525_s4, 4  ;;  %s1812_s16 = int_to_ptr.vmem [resolvable:$true] %s1811_s16 }
 0x160   :  { %1616 = vmatpush1.bf16.msra.mxu0 %v2303_v51  ;;  %1643 = vmatpush1.bf16.msra.mxu1 %v2306_v52  ;;  %v541_v52 = vrot.slane %v2624_v50, %v110_v19  ;;  %s2486_s17 = scalar_lea.vmem %s1812_s16, 896  ;;  %p2491_p7 = scmp.lt.s32.totalorder %s1812_s16, %s1812_s16 }
 0x161   :  { %1617 = vmatprep.subr.bf16.mxu0 %v2311_v53  ;;  %1644 = vmatprep.subr.bf16.mxu1 %v2314_v54  ;;  %p2487_p6 = scmp.ne.s32.totalorder %s1812_s16, %s2486_s17  ;;  %p2492_p8 = scmp.lt.s32.totalorder %s2486_s17, %s2486_s17 }
 0x162   :  { %1674 = vmatprep.mubr.bf16.mxu1 %v2524_v1  ;;  %v2330_v1 = vld [vmem:[#allocation8 + $0x438] ss:$28 sps:$4 sm:$0xff]  }
 0x163   :  { %p2493_p9 = por %p2492_p8, %p2491_p7 }
 0x164   :  { %1618 = vmatpush2.bf16.msra.mxu0 %v2309_v55  ;;  %1645 = vmatpush1.bf16.msra.mxu1 %v2312_v56 }
 0x165   :  { %1619 = vmatprep.subr.bf16.mxu0 %v2317_v57  ;;  %1646 = vmatprep.subr.bf16.mxu1 %v2320_v58  ;;  %p2494_p10 = pnand %p2493_p9, %p2487_p6 }
 0x168   :  { %1620 = vmatpush2.bf16.msra.mxu0 %v2315_v59  ;;  %1647 = vmatpush1.bf16.msra.mxu1 %v2318_v60 }
 0x169   :  { %1621 = vmatprep.subr.bf16.mxu0 %v2323_v61  ;;  %1648 = vmatprep.subr.bf16.mxu1 %v2326_v62 }
 0x16c   :  { %1622 = vmatpush2.bf16.msra.mxu0 %v2321_v63  ;;  %1649 = vmatpush1.bf16.msra.mxu1 %v2324_v2 }
 0x16d   :  { %1623 = vmatprep.subr.bf16.mxu0 %v2329_v3  ;;  %1650 = vmatprep.subr.bf16.mxu1 %v2332_v4 }
 0x170   :  { %1624 = vmatpush2.bf16.msra.mxu0 %v2327_v5  ;;  %1651 = vmatpush1.bf16.msra.mxu1 %v2330_v1 }
 0x171   :  { %1625 = vmatprep.subr.bf16.mxu0 %v2335_v6  ;;  %1652 = vmatprep.subr.bf16.mxu1 %v2338_v7 }
 0x174   :  { %1626 = vmatpush2.bf16.msra.mxu0 %v2333_v8  ;;  %1653 = vmatpush1.bf16.msra.mxu1 %v2336_v9 }
 0x175   :  { %1627 = vmatprep.subr.bf16.mxu0 %v2341_v10  ;;  %1654 = vmatprep.subr.bf16.mxu1 %v2344_v11  ;;  %v552_v11 = vsub.s32 3, %v2580_v16 }
 0x178   :  { %1628 = vmatpush2.bf16.msra.mxu0 %v2339_v12  ;;  %1655 = vmatpush1.bf16.msra.mxu1 %v2342_v13  ;;  %v549_v12 = vrot.slane %v2624_v50, %v118_v17  ;;  %v553_v13 = vrot.slane %v2624_v50, %v552_v11 }
 0x179   :  { %1629 = vmatprep.subr.bf16.mxu0 %v2347_v14  ;;  %1656 = vmatprep.subr.bf16.mxu1 %v2350_v15 }
 0x17c   :  { %1630 = vmatpush2.bf16.msra.mxu0 %v2345_v18  ;;  %1657 = vmatpush1.bf16.msra.mxu1 %v2348_v21 }
 0x17d   :  { %1631 = vmatprep.subr.bf16.mxu0 %v2353_v22  ;;  %2023 = vmatprep.subr.bf16.mxu1 %v2354_v23 }
 0x17f   :  { %1675 = vmatmul.mubr.bf16.vlgmr.msra.gmra.mxu1 %v2591_v37 }
 0x180   :  { %1632 = vmatpush2.bf16.msra.mxu0 %v2351_v24  ;;  %2024 = vmatpush3.bf16.msra.mxu1 %v2355_v25 }
 0x181   :  { %1715 = vmatprep.mubr.bf16.mxu1 %v2594_v44  ;;  %2025 = vmatprep.subr.bf16.mxu1 %v2356_v26  ;;  %v2363_v44 = vld [vmem:[#allocation8 + $0xf8] ss:$28 sps:$4 sm:$0xff]  }
 0x182   :  { %2074 = vmatprep.subr.bf16.mxu0 %v2522_v0 }
 0x183   :  { %1634 = vmatmul.mubr.bf16.vlgmr.msra.gmra.mxu0 %v2596_v47 }
 0x184   :  { %2026 = vmatpush3.bf16.msra.mxu1 %v2357_v27  ;;  %2075 = vmatpush3.bf16.msra.mxu0 %v2358_v28 }
 0x185   :  { %2027 = vmatprep.subr.bf16.mxu1 %v2359_v29  ;;  %2076 = vmatprep.subr.bf16.mxu0 %v2522_v0 }
 0x186   :  { %2090 = vmatprep.mubr.msk.bf16.mxu0 %vm2523_vm0, %v2522_v0 }
 0x188   :  { %2028 = vmatpush3.bf16.msra.mxu1 %v2360_v30  ;;  %2077 = vmatpush3.bf16.msra.mxu0 %v2361_v31 }
 0x189   :  { %2029 = vmatprep.subr.bf16.mxu1 %v2362_v32  ;;  %2078 = vmatprep.subr.bf16.mxu0 %v2522_v0 }
 0x18c   :  { %2030 = vmatpush3.bf16.msra.mxu1 %v2363_v44  ;;  %2079 = vmatpush3.bf16.msra.mxu0 %v2364_v33  ;;  %v556_v44 = vsub.s32 4, %v2580_v16  ;;  %v560_v33 = vsub.s32 5, %v2580_v16 }
 0x18d   :  { %2031 = vmatprep.subr.bf16.mxu1 %v2365_v34  ;;  %2080 = vmatprep.subr.bf16.mxu0 %v2522_v0 }
 0x190   :  { %2032 = vmatpush3.bf16.msra.mxu1 %v2366_v35  ;;  %2081 = vmatpush3.bf16.msra.mxu0 %v2367_v36  ;;  %v557_v35 = vrot.slane %v2624_v50, %v556_v44 }
 0x191   :  { %2033 = vmatprep.subr.bf16.mxu1 %v2368_v38  ;;  %2082 = vmatprep.subr.bf16.mxu0 %v2522_v0  ;;  %v561_v38 = vrot.slane %v2624_v50, %v560_v33 }
 0x194   :  { %2034 = vmatpush3.bf16.msra.mxu1 %v2369_v39  ;;  %2083 = vmatpush3.bf16.msra.mxu0 %v2370_v40 }
 0x195   :  { %2035 = vmatprep.subr.bf16.mxu1 %v2371_v41  ;;  %2084 = vmatprep.subr.bf16.mxu0 %v2522_v0 }
 0x198   :  { %2036 = vmatpush3.bf16.msra.mxu1 %v2372_v42  ;;  %2085 = vmatpush3.bf16.msra.mxu0 %v2373_v43 }
 0x199   :  { %2037 = vmatprep.subr.bf16.mxu1 %v2374_v45  ;;  %2086 = vmatprep.subr.bf16.mxu0 %v2522_v0 }
 0x19c   :  { %2038 = vmatpush3.bf16.msra.mxu1 %v2375_v46  ;;  %2087 = vmatpush3.bf16.msra.mxu0 %v2376_v48 }
 0x19d   :  { %2088 = vmatprep.subr.bf16.mxu0 %v2522_v0  ;;  %v545_v0 = vrot.slane %v2624_v50, %v114_v20 }
 0x19f   :  { %1716 = vmatmul.mubr.bf16.vlgmr.msra.gmra.mxu1 %v2596_v47 }
 0x1a0   :  { %2089 = vmatpush3.bf16.msra.mxu0 %v2377_v49 }
 0x1a3   :  { %2091 = vmatmul.mubr.bf16.vlgmr.msra.gmra.mxu0 %v2591_v37 }
 0x1df   :  { %v1512_v51 = vpop.f32.mrf.mxu1 }
 0x1e1   :  { %v1514_v53 = vpop.f32.mrf.mxu1 }
 0x1e3   :  { %v1471_v54 = vpop.f32.mrf.mxu0  ;;  %v1516_v47 = vpop.f32.mrf.mxu1 }
 0x1e4   :  { %v1472_v55 = vadd.f32 %v1471_v54, %v541_v52 }
 0x1e5   :  { %v1473_v56 = vpop.f32.mrf.mxu0  ;;  %v1517_v37 = vpop.f32.mrf.mxu1 }
 0x1e6   :  { %v1513_v57 = vadd.f32 %v1512_v51, %v1472_v55  ;;  %v1474_v58 = vadd.f32 %v1473_v56, %v545_v0 }
 0x1e7   :  { %v1475_v59 = vpop.f32.mrf.mxu0 }
 0x1e8   :  { %v1763_v60 = vsub.f32 0.0, %v1513_v57  ;;  %v1515_v61 = vadd.f32 %v1514_v53, %v1474_v58  ;;  %v564_v59 = vsub.s32 6, %v2580_v16 }
 0x1e9   :  { %v1476_v62 = vpop.f32.mrf.mxu0 }
 0x1ea   :  { %v1770_v63 = vmul.f32 1.442695, %v1763_v60  ;;  %v1764_v2 = vsub.f32 0.0, %v1515_v61  ;;  %v565_v61 = vrot.slane %v2624_v50, %v564_v59 }
 0x1ec   :  { %2378 = vpow2.f32 %v1770_v63  ;;  %v1772_v19 = vmul.f32 1.442695, %v1764_v2 }
 0x1ee   :  { %2380 = vpow2.f32 %v1772_v19 }
 0x1f9   :  { %v2379_v3 = vpop.eup %2378 }
 0x1fa   :  { %v1784_v4 = vadd.f32 1.0, %v2379_v3 }
 0x1fb   :  { %v2381_v5 = vpop.eup %2380 }
 0x1fc   :  { %2382 = vrcp.f32 %v1784_v4  ;;  %v1785_v20 = vadd.f32 1.0, %v2381_v5 }
 0x1fe   :  { %2384 = vrcp.f32 %v1785_v20 }
 0x203   :  { %v1594_v1 = vpop.f32.mrf.mxu0 }
 0x205   :  { %v1596_v6 = vpop.f32.mrf.mxu0 }
 0x207   :  { %v1598_v7 = vpop.f32.mrf.mxu0 }
 0x209   :  { %v2383_v8 = vpop.eup %2382  ;;  %v1599_v9 = vpop.f32.mrf.mxu0 }
 0x20a   :  { %1798 = vst [vmem:[#allocation10] sm:$0xff] %v2383_v8 }
 0x20b   :  { %v2385_v10 = vpop.eup %2384 }
 0x20c   :  { %1799 = vst [vmem:[#allocation10 + $0x8] sm:$0xff] %v2385_v10 }
 0x21f   :  { %v1553_v14 = vpop.f32.mrf.mxu1 }
 0x220   :  { %v1554_v15 = vadd.f32 %v1553_v14, %v549_v12 }
 0x221   :  { %v1555_v18 = vpop.f32.mrf.mxu1 }
 0x222   :  { %v1595_v21 = vadd.f32 %v1594_v1, %v1554_v15  ;;  %v1556_v22 = vadd.f32 %v1555_v18, %v553_v13 }
 0x223   :  { %v1557_v23 = vpop.f32.mrf.mxu1 }
 0x224   :  { %v1765_v24 = vsub.f32 0.0, %v1595_v21  ;;  %v1597_v25 = vadd.f32 %v1596_v6, %v1556_v22 }
 0x225   :  { %v1558_v26 = vpop.f32.mrf.mxu1 }
 0x226   :  { %v1774_v27 = vmul.f32 1.442695, %v1765_v24  ;;  %v1766_v28 = vsub.f32 0.0, %v1597_v25 }
 0x228   :  { %2386 = vpow2.f32 %v1774_v27  ;;  %v1776_v29 = vmul.f32 1.442695, %v1766_v28 }
 0x22a   :  { %2388 = vpow2.f32 %v1776_v29 }
 0x235   :  { %v2387_v30 = vpop.eup %2386 }
 0x236   :  { %v1786_v31 = vadd.f32 1.0, %v2387_v30 }
 0x237   :  { %v2389_v32 = vpop.eup %2388 }
 0x238   :  { %2390 = vrcp.f32 %v1786_v31  ;;  %v1787_v17 = vadd.f32 1.0, %v2389_v32 }
 0x23a   :  { %2392 = vrcp.f32 %v1787_v17 }
 0x23f   :  { %v1676_v34 = vpop.f32.mrf.mxu1 }
 0x241   :  { %v1678_v36 = vpop.f32.mrf.mxu1 }
 0x243   :  { %v1635_v39 = vpop.f32.mrf.mxu0  ;;  %v1680_v40 = vpop.f32.mrf.mxu1 }
 0x244   :  { %v1636_v41 = vadd.f32 %v1635_v39, %v557_v35 }
 0x245   :  { %v2391_v42 = vpop.eup %2390  ;;  %v1637_v43 = vpop.f32.mrf.mxu0 }
 0x246   :  { %v1681_v45 = vpop.f32.mrf.mxu1  ;;  %1800 = vst [vmem:[#allocation10 + $0x10] sm:$0xff] %v2391_v42  ;;  %v1677_v46 = vadd.f32 %v1676_v34, %v1636_v41  ;;  %v1638_v48 = vadd.f32 %v1637_v43, %v561_v38 }
 0x247   :  { %v2393_v49 = vpop.eup %2392  ;;  %v1639_v51 = vpop.f32.mrf.mxu0 }
 0x248   :  { %1801 = vst [vmem:[#allocation10 + $0x18] sm:$0xff] %v2393_v49  ;;  %v1767_v52 = vsub.f32 0.0, %v1677_v46  ;;  %v1679_v53 = vadd.f32 %v1678_v36, %v1638_v48 }
 0x249   :  { %v1640_v0 = vpop.f32.mrf.mxu0 }
 0x24a   :  { %v1778_v54 = vmul.f32 1.442695, %v1767_v52  ;;  %v1768_v47 = vsub.f32 0.0, %v1679_v53 }
 0x24c   :  { %2394 = vpow2.f32 %v1778_v54  ;;  %v1780_v55 = vmul.f32 1.442695, %v1768_v47 }
 0x24e   :  { %2396 = vpow2.f32 %v1780_v55 }
 0x259   :  { %v2395_v56 = vpop.eup %2394 }
 0x25a   :  { %v1788_v37 = vadd.f32 1.0, %v2395_v56 }
 0x25b   :  { %v2397_v57 = vpop.eup %2396 }
 0x25c   :  { %2398 = vrcp.f32 %v1788_v37  ;;  %v1789_v58 = vadd.f32 1.0, %v2397_v57 }
 0x25e   :  { %2400 = vrcp.f32 %v1789_v58 }
 0x25f   :  { %v2039_v60 = vpop.f32.mrf.mxu1 }
 0x261   :  { %v2040_v62 = vpop.f32.mrf.mxu1 }
 0x262   :  { %v2041_v63 = vadd.f32 %v2040_v62, %v2039_v60 }
 0x263   :  { %v2042_v2 = vpop.f32.mrf.mxu1  ;;  %v1757_v19 = vpop.f32.mrf.mxu0 }
 0x264   :  { %v1718_v3 = vadd.f32 %v2041_v63, %v565_v61 }
 0x265   :  { %v2043_v4 = vpop.f32.mrf.mxu1  ;;  %v2092_v5 = vpop.f32.mrf.mxu0 }
 0x266   :  { %v1758_v20 = vadd.f32 %v1757_v19, %v1718_v3 }
 0x267   :  { %v1760_v1 = vpop.f32.mrf.mxu0 }
 0x268   :  { %v1769_v6 = vsub.f32 0.0, %v1758_v20 }
 0x269   :  { %v2399_v7 = vpop.eup %2398  ;;  %v2093_v8 = vpop.f32.mrf.mxu0 }
 0x26a   :  { %1802 = vst [vmem:[#allocation10 + $0x20] sm:$0xff] %v2399_v7  ;;  %v1782_v9 = vmul.f32 1.442695, %v1769_v6 }
 0x26b   :  { %v2401_v10 = vpop.eup %2400 }
 0x26c   :  { %1803 = vst [vmem:[#allocation10 + $0x28] sm:$0xff] %v2401_v10  ;;  %2402 = vpow2.f32 %v1782_v9 }
 0x279   :  { %v2403_v16 = vpop.eup %2402 }
 0x27a   :  { %v1790_v11 = vadd.f32 1.0, %v2403_v16 }
 0x27c   :  { %2404 = vrcp.f32 %v1790_v11 }
 0x289   :  { %v2405_v50 = vpop.eup %2404 }
 0x28a   :  { %1804 = vst [vmem:[#allocation10 + $0x30] sm:$0xff] %v2405_v50 }
 0x28b   :  { %2497 = shalt.err (!%p2494_p10)
}
 0x28c   :  { %1814 = dma.vmem_to_hbm [thread:$0]  %s1812_s16, 896, %s2651_s5, [#allocation4]  }
 0x28d   :  { %2512 = dma.done.wait [#allocation4], 896  }
 0x28e   :  { %2513 = vsyncadd [#allocation4], 4294966400 }
 0x28f   :  { %1818 = vsyncpa [#allocation3], 1 }
 0x290   :  { %1819 = vsyncpa [#allocation6], 1 }
 0x291   :  { %1820 = vsyncpa [#allocation9], 1 }
 0x292   :  { %1821 = vsyncpa [#allocation4], 1 }

</bundles_post_ra>
